<compile_context>
chip_gen: v5e
topology: v5e:2x2
jax: 0.10.0
libtpu: 0.0.40
codegen_flags: <defaults>
</compile_context>

<pallas_src>
import functools

import jax
import jax.numpy as jnp
import numpy as np
from jax.experimental import pallas as pl
from jax.experimental.pallas import tpu as pltpu


def _conv_unshuffle_kernel(w_ref, p_ref, o_ref):
    """One batch element: out = W2d @ patches.

    w_ref : (Cout, 9*Cin)      flattened conv weights (VMEM, fetched once)
    p_ref : (1, 9*Cin, H*W)    im2col patches, M pre-ordered for PixelUnshuffle
    o_ref : (1, Cout, H*W)     lane-dense output slab
    """
    acc = jax.lax.dot_general(
        w_ref[...], p_ref[0],
        (((1,), (0,)), ((), ())),
        preferred_element_type=jnp.float32)
    o_ref[0] = acc.astype(o_ref.dtype)


def downsample_forward(x_nchw, w_oihw):
    """Forward pass of Downsample: 3x3/s1/p1 bias-free conv -> PixelUnshuffle(2).

    x_nchw : (N, Cin, H, W)        H, W must be even
    w_oihw : (Cout, Cin, 3, 3)     Cout = Cin // 2
    returns: (N, 4*Cout, H//2, W//2)
    """
    N, Cin, H, W = x_nchw.shape
    Cout = w_oihw.shape[0]
    K = 9 * Cin
    M = H * W
    r = 2

    # ---- wrapper-side im2col (layout glue, done once in HBM) -----------------
    xp = jnp.pad(x_nchw, ((0, 0), (0, 0), (1, 1), (1, 1)))          # zero pad
    taps = [xp[:, :, kh:kh + H, kw:kw + W] for kh in range(3) for kw in range(3)]
    p = jnp.stack(taps, axis=2)                                     # (N, Cin, 9, H, W)
    p = p.reshape(N, K, H, W)                                       # k = cin*9 + kh*3 + kw
    # Re-order spatial positions into PixelUnshuffle order: m = ((i*2+j)*H/2 + h')*W/2 + w'
    p = p.reshape(N, K, H // r, r, W // r, r)
    p = jnp.transpose(p, (0, 1, 3, 5, 2, 4))                        # (N, K, i, j, h', w')
    p = p.reshape(N, K, M)

    # Weight flattened to (Cout, 9*Cin) with the SAME k ordering (cin*9 + kh*3 + kw).
    w2d = w_oihw.reshape(Cout, K)

    out = pl.pallas_call(
        _conv_unshuffle_kernel,
        out_shape=jax.ShapeDtypeStruct((N, Cout, M), x_nchw.dtype),
        grid_spec=pltpu.PrefetchScalarGridSpec(
            num_scalar_prefetch=0,
            grid=(N,),
            in_specs=[
                pl.BlockSpec((Cout, K), lambda n: (0, 0)),          # constant -> DMA'd once
                pl.BlockSpec((1, K, M), lambda n: (n, 0, 0)),
            ],
            out_specs=pl.BlockSpec((1, Cout, M), lambda n: (n, 0, 0)),
        ),
        compiler_params=pltpu.CompilerParams(
            dimension_semantics=("parallel",)),
    )(w2d, p)

    # M is ordered (q = i*2+j, h', w'), so a plain reshape IS the PixelUnshuffle:
    # channel index becomes c*4 + i*2 + j, matching torch.nn.PixelUnshuffle(2).
    return out.reshape(N, Cout * r * r, H // r, W // r)


# ------------------------------ reference -----------------------------------
def _pixel_unshuffle(x, r):
    N, C, H, W = x.shape
    x = x.reshape(N, C, H // r, r, W // r, r)
    x = jnp.transpose(x, (0, 1, 3, 5, 2, 4))
    return x.reshape(N, C * r * r, H // r, W // r)


def _reference(x_nchw, w_oihw):
    conv = functools.partial(
        jax.lax.conv_general_dilated,
        window_strides=(1, 1), padding=((1, 1), (1, 1)),
        dimension_numbers=("NCHW", "OIHW", "NCHW"))
    return _pixel_unshuffle(conv(x_nchw, w_oihw), 2)


if __name__ == "__main__":
    # Small shapes consistent with the module: n_feat=32 -> conv 32->16 channels,
    # PixelUnshuffle(2) -> (N, 64, H/2, W/2).
    n_feat = 32
    N, H, W = 2, 16, 16
    Cin, Cout = n_feat, n_feat // 2

    key = jax.random.PRNGKey(0)
    kx, kw = jax.random.split(key, 2)
    x = jax.random.normal(kx, (N, Cin, H, W), dtype=jnp.float32)
    w = 0.1 * jax.random.normal(kw, (Cout, Cin, 3, 3), dtype=jnp.float32)  # OIHW, bias=False

    fwd = jax.jit(downsample_forward)
    out = jax.block_until_ready(fwd(x, w))
    ref = jax.block_until_ready(_reference(x, w))

    assert out.shape == (N, 2 * n_feat, H // 2, W // 2), out.shape
    np.testing.assert_allclose(np.asarray(out), np.asarray(ref), rtol=1e-4, atol=1e-4)
    print("KERNEL_OK")
</pallas_src>

<mosaic_0001>
module attributes {stable_mosaic.version = 11 : i64} {
  func.func @_conv_unshuffle_kernel(%arg0: i32, %arg1: memref<16x288xf32, #tpu.memory_space<vmem>>, %arg2: memref<1x288x256xf32, #tpu.memory_space<vmem>>, %arg3: memref<1x16x256xf32, #tpu.memory_space<vmem>>) attributes {dimension_semantics = [#tpu.dimension_semantics<parallel>], iteration_bounds = array<i64: 2>, scalar_prefetch = 0 : i64, scratch_operands = 0 : i64, tpu.core_type = #tpu.core_type<tc>, window_params = [{pipeline_mode = #tpu.pipeline_mode<synchronous>, transform_indices = @transform_0, window_bounds = array<i64: 16, 288>}, {transform_indices = @transform_1, window_bounds = array<i64: 1, 288, 256>}, {transform_indices = @transform_2, window_bounds = array<i64: 1, 16, 256>}]} {
    %c0 = arith.constant 0 : index
    %c0_0 = arith.constant 0 : index
    %0 = vector.load %arg1[%c0, %c0_0] : memref<16x288xf32, #tpu.memory_space<vmem>>, vector<16x288xf32>
    %c0_1 = arith.constant 0 : index
    %c0_2 = arith.constant 0 : index
    %c0_3 = arith.constant 0 : index
    %1 = vector.load %arg2[%c0_1, %c0_2, %c0_3] : memref<1x288x256xf32, #tpu.memory_space<vmem>>, vector<1x288x256xf32>
    %2 = vector.shape_cast %1 : vector<1x288x256xf32> to vector<288x256xf32>
    %cst = arith.constant dense<0.000000e+00> : vector<16x256xf32>
    %3 = tpu.matmul %0, %2, %cst {dimension_numbers = #tpu.dot_dimension_numbers<[1], [0], [0], [1], [0, 0, 1, 1], [], []>} : vector<16x288xf32>, vector<288x256xf32>, vector<16x256xf32> -> vector<16x256xf32>
    %c0_4 = arith.constant 0 : index
    %c0_5 = arith.constant 0 : index
    %c0_6 = arith.constant 0 : index
    %4 = vector.load %arg3[%c0_4, %c0_5, %c0_6] : memref<1x16x256xf32, #tpu.memory_space<vmem>>, vector<1x16x256xf32>
    %5 = vector.shape_cast %4 : vector<1x16x256xf32> to vector<16x256xf32>
    %6 = vector.shape_cast %3 : vector<16x256xf32> to vector<1x16x256xf32>
    tpu.vector_store %arg3[%c0_4, %c0_5, %c0_6], %6 {strides = array<i32>} : memref<1x16x256xf32, #tpu.memory_space<vmem>>, vector<1x16x256xf32>,
    return
  }
  func.func @transform_0(%arg0: i32) -> (i32, i32) {
    %c0_i32 = arith.constant 0 : i32
    %c0_i32_0 = arith.constant 0 : i32
    %c0_i32_1 = arith.constant 0 : i32
    return %c0_i32, %c0_i32_0 : i32, i32
  }
  func.func @transform_1(%arg0: i32) -> (i32, i32, i32) {
    %c0_i32 = arith.constant 0 : i32
    %c0_i32_0 = arith.constant 0 : i32
    %c0_i32_1 = arith.constant 0 : i32
    return %arg0, %c0_i32, %c0_i32_0 : i32, i32, i32
  }
  func.func @transform_2(%arg0: i32) -> (i32, i32, i32) {
    %c0_i32 = arith.constant 0 : i32
    %c0_i32_0 = arith.constant 0 : i32
    %c0_i32_1 = arith.constant 0 : i32
    return %arg0, %c0_i32, %c0_i32_0 : i32, i32, i32
  }
}

</mosaic_0001>

<bundles_post_ra>
// kernel: downsample_forward.1
= control target key start
LH: loop header
LB: loop body
LE: loop exit
PB: predicated region body
PF: predicated region fallthrough
CT: control target
= control target key end

     0   :  { %s477_s9 = smov 0   ;;  %s598_s0 = inlined_call_operand.vmem [shape: f32[16,288], index: 0, kind: input, shape index: {}]   ;;  %s599_s1 = inlined_call_operand.vmem [shape: f32[2,288,256], index: 1, kind: input, shape index: {}]   ;;  %s600_s2 = inlined_call_operand.vmem [shape: f32[2,16,256], index: 2, kind: output, shape index: {}]  }
   0x1 LB: > { %s426_s10 = sadd.s32 4294967295, %s460_s9   ;;  %p430_p0 = scmp.ge.s32.totalorder %s460_s9, 1  ;;  %s460_s9 = sphi %s477_s9, %s12_s9  }
   0x2   : > { %p112_p1 = scmp.lt.s32.totalorder %s460_s9, 3 }
   0x4   : > { %p113_p2 = pnand %p430_p0, %p112_p1 }
   0x5   : > { %p134_p3 = scmp.lt.s32.totalorder (!%p113_p2), %s426_s10, 1 }
   0x6   : > { %116 = sbr.rel (%p113_p2) target bundleno = 202 (0xca), region = 28 }
   0xb   : > { %s602_s10 = smov (!%p134_p3, %s426_s10), 1  ;;  %v537_v41 = vld [vmem:[%s598_s0 + $0x10] sm:$0xff]  ;;  %vm222_vm0 = vcmask 261120   ;;  %v149_v61 = vld [vmem:[%s598_s0 + $0x28] sm:$0xff]  ;;  %v144_v62 = vld [vmem:[%s598_s0] sm:$0xff] }
   0xc   : > { %s445_s11 = smul.u32 576, %s602_s10  ;;  %v145_v63 = vld [vmem:[%s598_s0 + $0x8] sm:$0xff]  ;;  %s440_s27 = sshll.u32 %s602_s10, 5 }
   0xd   : > { %s143_s30 = scalar_lea.vmem %s600_s2, %s440_s27 }
   0xe   : > { %s491_s14 = scalar_lea.vmem %s599_s1, %s445_s11 }
   0xf   : > { %v180_v0 = vld [vmem:[%s491_s14 + $0xf0] sm:$0xff]  ;;  %v178_v3 = vld [vmem:[%s491_s14 + $0xe0] sm:$0xff]  ;;  %v181_v11 = vld [vmem:[%s491_s14 + $0xf8] sm:$0xff] }
  0x10   : > { %v212_v1 = vld [vmem:[%s491_s14 + $0x1f0] sm:$0xff]  ;;  %229 = vmatpush.msra.mxu0 %v180_v0  ;;  %v210_v4 = vld [vmem:[%s491_s14 + $0x1e0] sm:$0xff]  ;;  %v179_v13 = vld [vmem:[%s491_s14 + $0xe8] sm:$0xff]  ;;  %298 = vmatpush.msra.mxu3 %v181_v11 }
  0x11   : > { %v220_v2 = vld [vmem:[%s491_s14 + $0x230] sm:$0xff]  ;;  %252 = vmatpush.msra.mxu1 %v212_v1  ;;  %v218_v5 = vld [vmem:[%s491_s14 + $0x220] sm:$0xff]  ;;  %v213_v14 = vld [vmem:[%s491_s14 + $0x1f8] sm:$0xff] }
  0x12   : > { %287 = vmatpush.msra.mxu2 %v220_v2  ;;  %v176_v6 = vld [vmem:[%s491_s14 + $0xd0] sm:$0xff]  ;;  %230 = vmatpush.msra.mxu0 %v178_v3  ;;  %v174_v9 = vld [vmem:[%s491_s14 + $0xc0] sm:$0xff]  ;;  %v177_v17 = vld [vmem:[%s491_s14 + $0xd8] sm:$0xff] }
  0x13   : > { %v208_v7 = vld [vmem:[%s491_s14 + $0x1d0] sm:$0xff]  ;;  %253 = vmatpush.msra.mxu1 %v210_v4  ;;  %v206_v10 = vld [vmem:[%s491_s14 + $0x1c0] sm:$0xff]  ;;  %299 = vmatpush.msra.mxu3 %v179_v13  ;;  %v211_v18 = vld [vmem:[%s491_s14 + $0x1e8] sm:$0xff] }
  0x14   : > { %v216_v8 = vld [vmem:[%s491_s14 + $0x210] sm:$0xff]  ;;  %288 = vmatpush.msra.mxu2 %v218_v5  ;;  %231 = vmatpush.msra.mxu0 %v176_v6  ;;  %v214_v12 = vld [vmem:[%s491_s14 + $0x200] sm:$0xff]  ;;  %v175_v21 = vld [vmem:[%s491_s14 + $0xc8] sm:$0xff] }
  0x15   : > { %254 = vmatpush.msra.mxu1 %v208_v7  ;;  %v172_v15 = vld [vmem:[%s491_s14 + $0xb0] sm:$0xff]  ;;  %v170_v19 = vld [vmem:[%s491_s14 + $0xa0] sm:$0xff]  ;;  %300 = vmatpush.msra.mxu3 %v177_v17  ;;  %v209_v22 = vld [vmem:[%s491_s14 + $0x1d8] sm:$0xff] }
  0x16   : > { %289 = vmatpush.msra.mxu2 %v216_v8  ;;  %232 = vmatpush.msra.mxu0 %v174_v9  ;;  %v204_v16 = vld [vmem:[%s491_s14 + $0x1b0] sm:$0xff]  ;;  %v202_v20 = vld [vmem:[%s491_s14 + $0x1a0] sm:$0xff]  ;;  %v173_v25 = vld [vmem:[%s491_s14 + $0xb8] sm:$0xff] }
  0x17   : > { %255 = vmatpush.msra.mxu1 %v206_v10  ;;  %v168_v23 = vld [vmem:[%s491_s14 + $0x90] sm:$0xff]  ;;  %301 = vmatpush.msra.mxu3 %v175_v21  ;;  %v207_v26 = vld [vmem:[%s491_s14 + $0x1c8] sm:$0xff]  ;;  %v166_v27 = vld [vmem:[%s491_s14 + $0x80] sm:$0xff] }
  0x18   : > { %290 = vmatpush.msra.mxu2 %v214_v12  ;;  %233 = vmatpush.msra.mxu0 %v172_v15  ;;  %v200_v24 = vld [vmem:[%s491_s14 + $0x190] sm:$0xff]  ;;  %v198_v28 = vld [vmem:[%s491_s14 + $0x180] sm:$0xff]  ;;  %v171_v29 = vld [vmem:[%s491_s14 + $0xa8] sm:$0xff] }
  0x19   : > { %256 = vmatpush.msra.mxu1 %v204_v16  ;;  %302 = vmatpush.msra.mxu3 %v173_v25  ;;  %v205_v30 = vld [vmem:[%s491_s14 + $0x1b8] sm:$0xff]  ;;  %v164_v31 = vld [vmem:[%s491_s14 + $0x70] sm:$0xff]  ;;  %v203_v34 = vld [vmem:[%s491_s14 + $0x1a8] sm:$0xff] }
  0x1a   : > { %321 = vmatpush.msrb.mxu2 %v213_v14  ;;  %234 = vmatpush.msra.mxu0 %v170_v19  ;;  %v196_v32 = vld [vmem:[%s491_s14 + $0x170] sm:$0xff]  ;;  %v169_v33 = vld [vmem:[%s491_s14 + $0x98] sm:$0xff]  ;;  %v162_v35 = vld [vmem:[%s491_s14 + $0x60] sm:$0xff] }
  0x1b   : > { %257 = vmatpush.msra.mxu1 %v202_v20  ;;  %303 = vmatpush.msra.mxu3 %v171_v29  ;;  %v194_v36 = vld [vmem:[%s491_s14 + $0x160] sm:$0xff]  ;;  %v167_v37 = vld [vmem:[%s491_s14 + $0x88] sm:$0xff]  ;;  %v201_v38 = vld [vmem:[%s491_s14 + $0x198] sm:$0xff] }
  0x1c   : > { %322 = vmatpush.msrb.mxu2 %v211_v18  ;;  %235 = vmatpush.msra.mxu0 %v168_v23  ;;  %v160_v39 = vld [vmem:[%s491_s14 + $0x50] sm:$0xff]  ;;  %v199_v42 = vld [vmem:[%s491_s14 + $0x188] sm:$0xff]  ;;  %v158_v43 = vld [vmem:[%s491_s14 + $0x40] sm:$0xff] }
  0x1d   : > { %258 = vmatpush.msra.mxu1 %v200_v24  ;;  %304 = vmatpush.msra.mxu3 %v169_v33  ;;  %v192_v40 = vld [vmem:[%s491_s14 + $0x150] sm:$0xff]  ;;  %v190_v44 = vld [vmem:[%s491_s14 + $0x140] sm:$0xff]  ;;  %v165_v45 = vld [vmem:[%s491_s14 + $0x78] sm:$0xff] }
  0x1e   : > { %323 = vmatpush.msrb.mxu2 %v209_v22  ;;  %236 = vmatpush.msra.mxu0 %v166_v27  ;;  %v197_v46 = vld [vmem:[%s491_s14 + $0x178] sm:$0xff]  ;;  %v156_v47 = vld [vmem:[%s491_s14 + $0x30] sm:$0xff]  ;;  %v163_v49 = vld [vmem:[%s491_s14 + $0x68] sm:$0xff] }
  0x1f   : > { %259 = vmatpush.msra.mxu1 %v198_v28  ;;  %305 = vmatpush.msra.mxu3 %v167_v37  ;;  %v188_v48 = vld [vmem:[%s491_s14 + $0x130] sm:$0xff]  ;;  %v195_v50 = vld [vmem:[%s491_s14 + $0x168] sm:$0xff]  ;;  %v154_v51 = vld [vmem:[%s491_s14 + $0x20] sm:$0xff] }
  0x20   : > { %324 = vmatpush.msrb.mxu2 %v207_v26  ;;  %237 = vmatpush.msra.mxu0 %v164_v31  ;;  %v186_v52 = vld [vmem:[%s491_s14 + $0x120] sm:$0xff]  ;;  %v161_v53 = vld [vmem:[%s491_s14 + $0x58] sm:$0xff]  ;;  %v152_v55 = vld [vmem:[%s491_s14 + $0x10] sm:$0xff] }
  0x21   : > { %260 = vmatpush.msra.mxu1 %v196_v32  ;;  %434 = vmatmul.msk.f32.vlgmr.msra.gmra.mxu2 %vm222_vm0, %v537_v41  ;;  %v193_v54 = vld [vmem:[%s491_s14 + $0x158] sm:$0xff]  ;;  %v184_v56 = vld [vmem:[%s491_s14 + $0x110] sm:$0xff]  ;;  %v159_v57 = vld [vmem:[%s491_s14 + $0x48] sm:$0xff] }
  0x22   : > { %325 = vmatpush.msrb.mxu2 %v205_v30  ;;  %238 = vmatpush.msra.mxu0 %v162_v35  ;;  %v191_v58 = vld [vmem:[%s491_s14 + $0x148] sm:$0xff]  ;;  %v150_v59 = vld [vmem:[%s491_s14] sm:$0xff]  ;;  %v157_v0 = vld [vmem:[%s491_s14 + $0x38] sm:$0xff] }
  0x23   : > { %261 = vmatpush.msra.mxu1 %v194_v36  ;;  %306 = vmatpush.msra.mxu3 %v165_v45  ;;  %v182_v60 = vld [vmem:[%s491_s14 + $0x100] sm:$0xff]  ;;  %v189_v1 = vld [vmem:[%s491_s14 + $0x138] sm:$0xff]  ;;  %v155_v3 = vld [vmem:[%s491_s14 + $0x28] sm:$0xff] }
  0x24   : > { %326 = vmatpush.msrb.mxu2 %v203_v34  ;;  %239 = vmatpush.msra.mxu0 %v160_v39  ;;  %v221_v2 = vld [vmem:[%s491_s14 + $0x238] sm:$0xff]  ;;  %v187_v4 = vld [vmem:[%s491_s14 + $0x128] sm:$0xff]  ;;  %v148_v12 = vld [vmem:[%s598_s0 + $0x20] sm:$0xff] }
  0x25   : > { %262 = vmatpush.msra.mxu1 %v192_v40  ;;  %307 = vmatpush.msra.mxu3 %v163_v49  ;;  %v219_v5 = vld [vmem:[%s491_s14 + $0x228] sm:$0xff]  ;;  %v153_v6 = vld [vmem:[%s491_s14 + $0x18] sm:$0xff] }
  0x26   : > { %327 = vmatpush.msrb.mxu2 %v201_v38  ;;  %240 = vmatpush.msra.mxu0 %v158_v43  ;;  %v185_v7 = vld [vmem:[%s491_s14 + $0x118] sm:$0xff]  ;;  %v151_v9 = vld [vmem:[%s491_s14 + $0x8] sm:$0xff] }
  0x27   : > { %263 = vmatpush.msra.mxu1 %v190_v44  ;;  %308 = vmatpush.msra.mxu3 %v161_v53  ;;  %v217_v8 = vld [vmem:[%s491_s14 + $0x218] sm:$0xff]  ;;  %v183_v10 = vld [vmem:[%s491_s14 + $0x108] sm:$0xff] }
  0x28   : > { %328 = vmatpush.msrb.mxu2 %v199_v42  ;;  %241 = vmatpush.msra.mxu0 %v156_v47  ;;  %v147_v11 = vld [vmem:[%s598_s0 + $0x18] sm:$0xff]  ;;  %v215_v13 = vld [vmem:[%s491_s14 + $0x208] sm:$0xff] }
  0x29   : > { %264 = vmatpush.msra.mxu1 %v188_v48  ;;  %309 = vmatpush.msra.mxu3 %v159_v57 }
  0x2a   : > { %329 = vmatpush.msrb.mxu2 %v197_v46  ;;  %242 = vmatpush.msra.mxu0 %v154_v51 }
  0x2b   : > { %265 = vmatpush.msra.mxu1 %v186_v52  ;;  %435 = vmatmul.msk.f32.gmra.mxu2 %vm222_vm0, %v149_v61 }
  0x2c   : > { %330 = vmatpush.msrb.mxu2 %v195_v50  ;;  %243 = vmatpush.msra.mxu0 %v152_v55 }
  0x2d   : > { %266 = vmatpush.msra.mxu1 %v184_v56  ;;  %310 = vmatpush.msra.mxu3 %v157_v0 }
  0x2e   : > { %331 = vmatpush.msrb.mxu2 %v193_v54  ;;  %244 = vmatpush.msra.mxu0 %v150_v59 }
  0x2f   : > { %267 = vmatpush.msra.mxu1 %v182_v60  ;;  %245 = vmatmul.f32.vlgmr.msra.gmra.mxu0 %v144_v62 }
  0x30   : > { %332 = vmatpush.msrb.mxu2 %v191_v58  ;;  %268 = vmatmul.f32.vlgmr.msra.gmra.mxu1 %v145_v63 }
  0x31   : > { %356 = vmatpush.msrb.mxu0 %v221_v2  ;;  %441 = vmatpush.msrb.mxu1 %v221_v2 }
  0x32   : > { %333 = vmatpush.msrb.mxu2 %v189_v1  ;;  %311 = vmatpush.msra.mxu3 %v155_v3 }
  0x33   : > { %357 = vmatpush.msrb.mxu0 %v219_v5  ;;  %442 = vmatpush.msrb.mxu1 %v219_v5 }
  0x34   : > { %334 = vmatpush.msrb.mxu2 %v187_v4  ;;  %312 = vmatpush.msra.mxu3 %v153_v6 }
  0x35   : > { %358 = vmatpush.msrb.mxu0 %v217_v8  ;;  %443 = vmatpush.msrb.mxu1 %v217_v8 }
  0x36   : > { %335 = vmatpush.msrb.mxu2 %v185_v7  ;;  %313 = vmatpush.msra.mxu3 %v151_v9 }
  0x37   : > { %314 = vmatmul.f32.vlgmr.msra.gmra.mxu3 %v144_v62  ;;  %248 = vmatmul.f32.gmra.mxu0 %v147_v11 }
  0x38   : > { %336 = vmatpush.msrb.mxu2 %v183_v10  ;;  %271 = vmatmul.f32.gmra.mxu1 %v148_v12 }
  0x39   : > { %337 = vmatmul.f32.vlgmr.msrb.gmra.mxu2 %v145_v63  ;;  %359 = vmatpush.msrb.mxu0 %v215_v13 }
  0x3a   : > { %444 = vmatpush.msrb.mxu1 %v215_v13 }
  0x3f   : > { %317 = vmatmul.f32.gmra.mxu3 %v147_v11  ;;  %436 = vmatmul.msk.f32.vlgmr.msrb.gmra.mxu0 %vm222_vm0, %v537_v41 }
  0x40   : > { %437 = vmatmul.msk.f32.vlgmr.msrb.gmra.mxu1 %vm222_vm0, %v149_v61 }
  0x41   : > { %340 = vmatmul.f32.gmra.mxu2 %v148_v12 }
  0xa4   : > { %v292_v14 = vpop.f32.mrf.mxu2 }
  0xac   : > { %v246_v15 = vpop.f32.mrf.mxu0 }
  0xad   : > { %v269_v16 = vpop.f32.mrf.mxu1 }
  0xae   : > { %v270_v17 = vadd.f32 %v269_v16, %v246_v15  ;;  %v295_v19 = vpop.f32.mrf.mxu2 }
  0xb0   : > { %v293_v18 = vadd.f32 %v292_v14, %v270_v17 }
  0xb2   : > { %367 = vst [vmem:[%s143_s30] sm:$0xff] %v293_v18 }
  0xb4   : > { %v249_v20 = vpop.f32.mrf.mxu0 }
  0xb5   : > { %v272_v21 = vpop.f32.mrf.mxu1 }
  0xb6   : > { %v273_v22 = vadd.f32 %v272_v21, %v249_v20 }
  0xb8   : > { %v296_v23 = vadd.f32 %v295_v19, %v273_v22 }
  0xba   : > { %369 = vst [vmem:[%s143_s30 + $0x10] sm:$0xff] %v296_v23  ;;  %v315_v24 = vpop.f32.mrf.mxu3 }
  0xbc   : > { %v338_v25 = vpop.f32.mrf.mxu2  ;;  %v361_v27 = vpop.f32.mrf.mxu0 }
  0xbd   : > { %v339_v26 = vadd.f32 %v338_v25, %v315_v24  ;;  %v364_v29 = vpop.f32.mrf.mxu1 }
  0xbf   : > { %v362_v28 = vadd.f32 %v361_v27, %v339_v26 }
  0xc1   : > { %368 = vst [vmem:[%s143_s30 + $0x8] sm:$0xff] %v362_v28 }
  0xc2   : > { %v318_v30 = vpop.f32.mrf.mxu3 }
  0xc4   : > { %v341_v31 = vpop.f32.mrf.mxu2 }
  0xc5   : > { %v342_v32 = vadd.f32 %v341_v31, %v318_v30 }
  0xc7   : > { %v365_v33 = vadd.f32 %v364_v29, %v342_v32 }
  0xc9   : > { %370 = vst [vmem:[%s143_s30 + $0x18] sm:$0xff] %v365_v33 }
  0xca PF: > { %s12_s9 = sadd.s32 1, %s460_s9  }
  0xcb   : > { %p9_p4 = scmp.ge.s32.totalorder %s12_s9, 4  }
  0xcd   :  { %11 = sbr.rel (!%p9_p4) target bundleno = 1 (0x1), region = 58 }

</bundles_post_ra>
